<compile_context>
chip_gen: v5e
topology: v5e:2x2
jax: 0.10.0
libtpu: 0.0.40
codegen_flags: <defaults>
</compile_context>

<pallas_src>
import functools

import jax
import jax.numpy as jnp
from jax.experimental import pallas as pl
from jax.experimental.pallas import tpu as pltpu


_H1, _H2 = 400, 300   # logical hidden widths from the PyTorch module
_LANE = 128


def _round_up(n, m):
    return ((n + m - 1) // m) * m


def _actor_kernel(x_ref, w1_ref, b1_ref, w2_ref, b2_ref, w3_ref, b3_ref,
                  o_ref, *, action_range, min_action, action_dim):
    # Mirrors `state.float()`; matmul inputs are bf16 (MXU-native), all
    # accumulation and VPU/EUP elementwise math stays f32.
    x = x_ref[...].astype(jnp.bfloat16)

    h1 = jnp.dot(x, w1_ref[...],
                 preferred_element_type=jnp.float32) + b1_ref[...]
    h1 = jnp.maximum(h1, 0.0)                                       # ReLU

    h2 = jnp.dot(h1.astype(jnp.bfloat16), w2_ref[...],
                 preferred_element_type=jnp.float32) + b2_ref[...]
    h2 = jnp.maximum(h2, 0.0)                                       # ReLU

    z = jnp.dot(h2.astype(jnp.bfloat16), w3_ref[...],
                preferred_element_type=jnp.float32) + b3_ref[...]
    # Slice off the 128-lane padding of the last layer, then Sigmoid + affine.
    a = jax.nn.sigmoid(z[:, :action_dim]) * action_range + min_action
    o_ref[...] = a


def _cost_estimate(B, action_dim, params):
    w1, b1, w2, b2, w3, b3 = params
    flops = 2 * B * (w1.shape[0] * w1.shape[1]
                     + w2.shape[0] * w2.shape[1]
                     + w3.shape[0] * w3.shape[1])
    bytes_accessed = (B * w1.shape[0] * 4 + B * action_dim * 4
                      + sum(int(p.size) * p.dtype.itemsize for p in params))
    return pl.CostEstimate(flops=int(flops),
                           transcendentals=int(B * action_dim),
                           bytes_accessed=int(bytes_accessed))


def actor_forward(state, params, action_dim, min_action, max_action,
                  *, batch_tile=1024):
    """Fused Actor forward.  Returns (B, action_dim) float32 actions."""
    w1, b1, w2, b2, w3, b3 = params          # weights bf16, biases f32
    B, S = state.shape
    action_range = float(max_action - min_action)

    kernel = functools.partial(_actor_kernel,
                               action_range=action_range,
                               min_action=float(min_action),
                               action_dim=action_dim)
    cost = _cost_estimate(B, action_dim, params)
    out_shape = jax.ShapeDtypeStruct((B, action_dim), jnp.float32)

    if B <= batch_tile:
        # Latency-bound regime: single fused grid point, everything in VMEM.
        # TODO(synk): for repeated small-batch rollout calls, prefetch/pin the
        # ~0.3 MiB weight set across calls (cross-pallas_call future pattern)
        # so the weight DMA comes off the critical path.
        vmem = pl.BlockSpec(memory_space=pltpu.MemorySpace.VMEM)
        return pl.pallas_call(
            kernel,
            out_shape=out_shape,
            in_specs=[vmem] * 7,
            out_specs=vmem,
            cost_estimate=cost,
        )(state, *params)

    # Tile only the batch axis; weights stay VMEM-resident (constant index_map
    # -> no re-DMA per step).  Even number of grid steps for v7x megacore;
    # Pallas masks the ragged last block so no wrapper-side padding of state.
    n_steps = pl.cdiv(B, batch_tile)
    n_steps += n_steps % 2
    tile = _round_up(pl.cdiv(B, n_steps), 8)
    n_steps = pl.cdiv(B, tile)

    const = lambda i: (0, 0)
    in_specs = [
        pl.BlockSpec((tile, S), lambda i: (i, 0)),
        pl.BlockSpec(w1.shape, const), pl.BlockSpec(b1.shape, const),
        pl.BlockSpec(w2.shape, const), pl.BlockSpec(b2.shape, const),
        pl.BlockSpec(w3.shape, const), pl.BlockSpec(b3.shape, const),
    ]
    return pl.pallas_call(
        kernel,
        out_shape=out_shape,
        grid=(n_steps,),
        in_specs=in_specs,
        out_specs=pl.BlockSpec((tile, action_dim), lambda i: (i, 0)),
        compiler_params=pltpu.CompilerParams(
            dimension_semantics=("parallel",),
            vmem_limit_bytes=32 * 1024 * 1024),
        cost_estimate=cost,
    )(state, *params)


def init_actor_params(key, state_dim, action_dim):
    """PyTorch-style U(+/-1/sqrt(fan_in)) init.  Weights are stored transposed
    vs PyTorch ((in_dim, out_dim)) in bfloat16 (halves weight DMA); only the
    final layer's output axis is zero-padded to a 128-lane multiple (padded
    lanes are sliced off inside the kernel).  Biases stay f32."""
    ap = _round_up(action_dim, _LANE)
    dims = [(state_dim, _H1, _H1),
            (_H1, _H2, _H2),
            (_H2, action_dim, ap)]
    params = []
    for i, (fan_in, fan_out, cols_p) in enumerate(dims):
        kw, kb = jax.random.split(jax.random.fold_in(key, i))
        bound = 1.0 / (float(fan_in) ** 0.5)
        w = jax.random.uniform(kw, (fan_in, fan_out), jnp.float32, -bound, bound)
        b = jax.random.uniform(kb, (1, fan_out), jnp.float32, -bound, bound)
        if cols_p != fan_out:
            w = jnp.pad(w, ((0, 0), (0, cols_p - fan_out)))
            b = jnp.pad(b, ((0, 0), (0, cols_p - fan_out)))
        params.extend([w.astype(jnp.bfloat16), b])
    return tuple(params)


def actor_reference(state, params, action_dim, min_action, max_action):
    """Pure-JAX reference mirroring the kernel's mixed precision
    (bf16 matmul inputs, f32 accumulation / elementwise)."""
    w1, b1, w2, b2, w3, b3 = params
    x = state.astype(jnp.float32)
    h1 = jnp.maximum(jnp.dot(x.astype(jnp.bfloat16), w1,
                             preferred_element_type=jnp.float32) + b1, 0.0)
    h2 = jnp.maximum(jnp.dot(h1.astype(jnp.bfloat16), w2,
                             preferred_element_type=jnp.float32) + b2, 0.0)
    z = jnp.dot(h2.astype(jnp.bfloat16), w3,
                preferred_element_type=jnp.float32) + b3
    raw = jax.nn.sigmoid(z[:, :action_dim])
    return raw * (max_action - min_action) + min_action


if __name__ == "__main__":
    key = jax.random.PRNGKey(0)
    k_state, k_params, k_big = jax.random.split(key, 3)

    batch = 8
    state_dim = 16
    action_dim = 4
    min_action = -2.0
    max_action = 2.0

    state = jax.random.normal(k_state, (batch, state_dim), dtype=jnp.float32)
    params = init_actor_params(k_params, state_dim, action_dim)

    # Small batch: single fused grid point (latency path).
    out = actor_forward(state, params, action_dim, min_action, max_action)
    out = jax.block_until_ready(out)
    ref = actor_reference(state, params, action_dim, min_action, max_action)
    assert out.shape == (batch, action_dim)
    assert jnp.allclose(out, ref, atol=2e-3, rtol=2e-3), \
        float(jnp.max(jnp.abs(out - ref)))

    # Large batch: exercises the batch-tiled ("parallel") grid path with a
    # ragged last block and an even number of grid steps (v7x megacore).
    big_b = 2500
    big_state = jax.random.normal(k_big, (big_b, state_dim), dtype=jnp.float32)
    out_big = jax.block_until_ready(
        actor_forward(big_state, params, action_dim, min_action, max_action))
    ref_big = actor_reference(big_state, params, action_dim, min_action,
                              max_action)
    assert out_big.shape == (big_b, action_dim)
    assert jnp.allclose(out_big, ref_big, atol=2e-3, rtol=2e-3), \
        float(jnp.max(jnp.abs(out_big - ref_big)))

    print("KERNEL_OK")
</pallas_src>

<mosaic_0001>
module attributes {stable_mosaic.version = 11 : i64} {
  func.func @_actor_kernel(%arg0: memref<8x16xf32, #tpu.memory_space<vmem>>, %arg1: memref<16x400xbf16, #tpu.memory_space<vmem>>, %arg2: memref<1x400xf32, #tpu.memory_space<vmem>>, %arg3: memref<400x300xbf16, #tpu.memory_space<vmem>>, %arg4: memref<1x300xf32, #tpu.memory_space<vmem>>, %arg5: memref<300x128xbf16, #tpu.memory_space<vmem>>, %arg6: memref<1x128xf32, #tpu.memory_space<vmem>>, %arg7: memref<8x4xf32, #tpu.memory_space<vmem>>) attributes {dimension_semantics = [], scalar_prefetch = 0 : i64, scratch_operands = 0 : i64, tpu.core_type = #tpu.core_type<tc>} {
    %c0 = arith.constant 0 : index
    %c0_0 = arith.constant 0 : index
    %0 = vector.load %arg0[%c0, %c0_0] : memref<8x16xf32, #tpu.memory_space<vmem>>, vector<8x16xf32>
    %1 = arith.truncf %0 : vector<8x16xf32> to vector<8x16xbf16>
    %c0_1 = arith.constant 0 : index
    %c0_2 = arith.constant 0 : index
    %2 = vector.load %arg1[%c0_1, %c0_2] : memref<16x400xbf16, #tpu.memory_space<vmem>>, vector<16x400xbf16>
    %cst = arith.constant dense<0.000000e+00> : vector<8x400xf32>
    %3 = tpu.matmul %1, %2, %cst {dimension_numbers = #tpu.dot_dimension_numbers<[1], [0], [0], [1], [0, 0, 1, 1], [], []>} : vector<8x16xbf16>, vector<16x400xbf16>, vector<8x400xf32> -> vector<8x400xf32>
    %c0_3 = arith.constant 0 : index
    %c0_4 = arith.constant 0 : index
    %4 = vector.load %arg2[%c0_3, %c0_4] : memref<1x400xf32, #tpu.memory_space<vmem>>, vector<1x400xf32>
    %5 = vector.broadcast %4 : vector<1x400xf32> to vector<8x400xf32>
    %6 = arith.addf %3, %5 : vector<8x400xf32>
    %cst_5 = arith.constant 0.000000e+00 : f32
    %7 = vector.broadcast %cst_5 : f32 to vector<8x400xf32>
    %8 = arith.maximumf %6, %7 : vector<8x400xf32>
    %9 = arith.truncf %8 : vector<8x400xf32> to vector<8x400xbf16>
    %c0_6 = arith.constant 0 : index
    %c0_7 = arith.constant 0 : index
    %10 = vector.load %arg3[%c0_6, %c0_7] : memref<400x300xbf16, #tpu.memory_space<vmem>>, vector<400x300xbf16>
    %cst_8 = arith.constant dense<0.000000e+00> : vector<8x300xf32>
    %11 = tpu.matmul %9, %10, %cst_8 {dimension_numbers = #tpu.dot_dimension_numbers<[1], [0], [0], [1], [0, 0, 1, 1], [], []>} : vector<8x400xbf16>, vector<400x300xbf16>, vector<8x300xf32> -> vector<8x300xf32>
    %c0_9 = arith.constant 0 : index
    %c0_10 = arith.constant 0 : index
    %12 = vector.load %arg4[%c0_9, %c0_10] : memref<1x300xf32, #tpu.memory_space<vmem>>, vector<1x300xf32>
    %13 = vector.broadcast %12 : vector<1x300xf32> to vector<8x300xf32>
    %14 = arith.addf %11, %13 : vector<8x300xf32>
    %cst_11 = arith.constant 0.000000e+00 : f32
    %15 = vector.broadcast %cst_11 : f32 to vector<8x300xf32>
    %16 = arith.maximumf %14, %15 : vector<8x300xf32>
    %17 = arith.truncf %16 : vector<8x300xf32> to vector<8x300xbf16>
    %c0_12 = arith.constant 0 : index
    %c0_13 = arith.constant 0 : index
    %18 = vector.load %arg5[%c0_12, %c0_13] : memref<300x128xbf16, #tpu.memory_space<vmem>>, vector<300x128xbf16>
    %cst_14 = arith.constant dense<0.000000e+00> : vector<8x128xf32>
    %19 = tpu.matmul %17, %18, %cst_14 {dimension_numbers = #tpu.dot_dimension_numbers<[1], [0], [0], [1], [0, 0, 1, 1], [], []>} : vector<8x300xbf16>, vector<300x128xbf16>, vector<8x128xf32> -> vector<8x128xf32>
    %c0_15 = arith.constant 0 : index
    %c0_16 = arith.constant 0 : index
    %20 = vector.load %arg6[%c0_15, %c0_16] : memref<1x128xf32, #tpu.memory_space<vmem>>, vector<1x128xf32>
    %21 = vector.broadcast %20 : vector<1x128xf32> to vector<8x128xf32>
    %22 = arith.addf %19, %21 : vector<8x128xf32>
    %23 = vector.extract_strided_slice %22 {offsets = [0, 0], sizes = [8, 4], strides = [1, 1]} : vector<8x128xf32> to vector<8x4xf32>
    %24 = arith.negf %23 : vector<8x4xf32>
    %25 = math.exp %24 : vector<8x4xf32>
    %cst_17 = arith.constant 1.000000e+00 : f32
    %26 = vector.broadcast %cst_17 : f32 to vector<8x4xf32>
    %27 = arith.addf %26, %25 : vector<8x4xf32>
    %28 = arith.divf %26, %27 : vector<8x4xf32>
    %cst_18 = arith.constant 4.000000e+00 : f32
    %29 = vector.broadcast %cst_18 : f32 to vector<8x4xf32>
    %30 = arith.mulf %28, %29 : vector<8x4xf32>
    %cst_19 = arith.constant -2.000000e+00 : f32
    %31 = vector.broadcast %cst_19 : f32 to vector<8x4xf32>
    %32 = arith.addf %30, %31 : vector<8x4xf32>
    %c0_20 = arith.constant 0 : index
    %c0_21 = arith.constant 0 : index
    %33 = vector.load %arg7[%c0_20, %c0_21] : memref<8x4xf32, #tpu.memory_space<vmem>>, vector<8x4xf32>
    tpu.vector_store %arg7[%c0_20, %c0_21], %32 {strides = array<i32>} : memref<8x4xf32, #tpu.memory_space<vmem>>, vector<8x4xf32>,
    return
  }
}

</mosaic_0001>

<bundles_post_ra>
// kernel: tpu_custom_call.1
= control target key start
LH: loop header
LB: loop body
LE: loop exit
PB: predicated region body
PF: predicated region fallthrough
CT: control target
= control target key end

     0   :  { %12 = vsyncpa [#allocation3], 0  ;;  %s1849_s0 = inlined_call_operand.hbm [shape: f32[8,16], index: 0, kind: input, shape index: {}]   ;;  %s1850_s1 = inlined_call_operand.hbm [shape: bf16[16,400], index: 1, kind: input, shape index: {}]   ;;  %s1851_s2 = inlined_call_operand.hbm [shape: f32[1,400], index: 2, kind: input, shape index: {}]   ;;  %s1852_s3 = inlined_call_operand.hbm [shape: bf16[400,300], index: 3, kind: input, shape index: {}]   ;;  %s1853_s4 = inlined_call_operand.vmem [shape: f32[1,300], index: 4, kind: input, shape index: {}]   ;;  %s1854_s5 = inlined_call_operand.hbm [shape: bf16[300,128], index: 5, kind: input, shape index: {}]   ;;  %s1855_s6 = inlined_call_operand.vmem [shape: f32[1,128], index: 6, kind: input, shape index: {}]   ;;  %s1856_s7 = inlined_call_operand.vmem [shape: f32[8,4], index: 7, kind: output, shape index: {}]  }
   0x1   :  { %13 = vsyncpa [#allocation5], 0  ;;  %s30_s26 = sshll.u32 %s1850_s1, 4  ;;  %s31_s26 = int_to_ptr.hbm [resolvable:$true] %s30_s26 }
   0x2   :  { %14 = vsyncpa [#allocation8], 0  ;;  %s1747_s27 = smov [#allocation4]   ;;  %s54_s8 = sshll.u32 %s1852_s3, 4  ;;  %s55_s8 = int_to_ptr.hbm [resolvable:$true] %s54_s8 }
   0x3   :  { %s32_s28 = sshll.u32 %s1747_s27, 4  ;;  %s1748_s9 = smov 256   ;;  %s33_s28 = int_to_ptr.vmem [resolvable:$true] %s32_s28 }
   0x4   :  { %s1749_s10 = smov 16   ;;  %s1750_s11 = smov [#allocation7]  }
   0x5   :  { %38 = dma.hbm_to_vmem [thread:$0]  %s31_s26, 512, %s33_s28, [#allocation5], %s1748_s9, %s1748_s9, %s1749_s10  }
   0x6   :  { %s56_s12 = sshll.u32 %s1750_s11, 4  ;;  %s1751_s13 = smov 192   ;;  %s57_s12 = int_to_ptr.vmem [resolvable:$true] %s56_s12 }
   0x7   :  { %s1752_s14 = smov 12   ;;  %s20_s16 = sshll.u32 %s1849_s0, 4  ;;  %s21_s16 = int_to_ptr.hbm [resolvable:$true] %s20_s16 }
   0x8   :  { %62 = dma.hbm_to_vmem [thread:$0]  %s55_s8, 9600, %s57_s12, [#allocation8], %s1751_s13, %s1751_s13, %s1752_s14  }
   0x9   :  { %s1753_s17 = smov [#allocation2]   ;;  %s44_s20 = sshll.u32 %s1851_s2, 4  ;;  %s45_s20 = int_to_ptr.hbm [resolvable:$true] %s44_s20 }
   0xa   :  { %s22_s18 = sshll.u32 %s1753_s17, 4  ;;  %s1754_s21 = smov [#allocation6]   ;;  %s23_s18 = int_to_ptr.vmem [resolvable:$true] %s22_s18 }
   0xb   :  { %25 = dma.hbm_to_vmem [thread:$0]  %s21_s16, 128, %s23_s18, [#allocation3]  }
   0xc   :  { %s46_s22 = sshll.u32 %s1754_s21, 4  ;;  %s69_s25 = sshll.u32 %s1854_s5, 4  ;;  %s47_s22 = int_to_ptr.vmem [resolvable:$true] %s46_s22  ;;  %s70_s25 = int_to_ptr.hbm [resolvable:$true] %s69_s25 }
   0xd   :  { %49 = dma.hbm_to_vmem [thread:$0]  %s45_s20, 64, %s47_s22, [#allocation5]  }
   0xe   :  { %s1755_s0 = smov [#allocation9]   ;;  %s1756_s27 = smov 64  }
   0xf   :  { %s71_s26 = sshll.u32 %s1755_s0, 4  ;;  %s1757_s28 = smov 4   ;;  %s72_s26 = int_to_ptr.vmem [resolvable:$true] %s71_s26 }
  0x10   :  { %77 = dma.hbm_to_vmem [thread:$0]  %s70_s25, 2432, %s72_s26, [#allocation8], %s1756_s27, %s1756_s27, %s1757_s28  }
  0x11   :  { %1741 = dma.done.wait [#allocation3], 128  }
  0x12   :  { %1742 = vsyncadd [#allocation3], 4294967168 }
  0x13   :  { %1743 = dma.done.wait [#allocation5], 576  }
  0x14   :  { %1744 = vsyncadd [#allocation5], 4294966720 }
  0x15   :  { %1745 = dma.done.wait [#allocation8], 12032  }
  0x16   :  { %1746 = vsyncadd [#allocation8], 4294955264  ;;  %v1108_v0 = vld [vmem:[#allocation4] sm:$0xf]  ;;  %v1509_v1 = vld [vmem:[#allocation4 + $0xc] sm:$0xf0] }
  0x17   :  { %v1507_v2 = vld [vmem:[#allocation4 + $0x4] sm:$0xf]  ;;  %v1109_v3 = vor.u32 %v1509_v1, %v1108_v0  ;;  %v1110_v4 = vld [vmem:[#allocation4 + $0x10] sm:$0xf0]  ;;  %v1116_v5 = vld [vmem:[#allocation4 + $0x8] sm:$0xf] }
  0x18   :  { %v1510_v6 = vld [vmem:[#allocation4 + $0x14] sm:$0xf0]  ;;  %v1113_v7 = vor.u32 %v1507_v2, %v1110_v4  ;;  %v1508_v9 = vld [vmem:[#allocation4 + $0xc] sm:$0xf]  ;;  %v1118_v10 = vld [vmem:[#allocation4 + $0x18] sm:$0xf0] }
  0x19   :  { %v1117_v8 = vor.u32 %v1510_v6, %v1116_v5  ;;  %v101_v11 = vld [vmem:[#allocation2] sm:$0xff]  ;;  %148 = vmatpush.bf16.msra.mxu0 %v1109_v3  ;;  %v1121_v12 = vor.u32 %v1508_v9, %v1118_v10  ;;  %vm137_vm0 = vcmask 130048   ;;  %v1212_v14 = vld [vmem:[#allocation7 + $0xa8] sm:$0xf]  ;;  %v1200_v17 = vld [vmem:[#allocation7 + $0x90] sm:$0xf] }
  0x1a   :  { %v102_v13 = vpack.c.bf16 %v101_v11, %v101_v11  ;;  %v1533_v15 = vld [vmem:[#allocation7 + $0xb0] sm:$0xf0]  ;;  %161 = vmatpush.bf16.msra.mxu1 %v1113_v7  ;;  %v1530_v18 = vld [vmem:[#allocation7 + $0x98] sm:$0xf0]  ;;  %v1308_v19 = vld [vmem:[#allocation7 + $0x168] sm:$0xf] }
  0x1b   :  { %174 = vmatpush.bf16.msra.mxu2 %v1117_v8  ;;  %v1213_v16 = vor.u32 %v1533_v15, %v1212_v14  ;;  %187 = vmatpush.bf16.msra.mxu3 %v1121_v12  ;;  %v1557_v20 = vld [vmem:[#allocation7 + $0x170] sm:$0xf0]  ;;  %v1296_v22 = vld [vmem:[#allocation7 + $0x150] sm:$0xf]  ;;  %v1554_v23 = vld [vmem:[#allocation7 + $0x158] sm:$0xf0]  ;;  %v1201_v24 = vor.u32 %v1530_v18, %v1200_v17 }
  0x1c   :  { %1122 = vmatmul.msk.bf16.vlgmr.msra.gmra.mxu0 %vm137_vm0, %v102_v13  ;;  %v1309_v21 = vor.u32 %v1557_v20, %v1308_v19  ;;  %v1188_v25 = vld [vmem:[#allocation7 + $0x78] sm:$0xf]  ;;  %v1527_v26 = vld [vmem:[#allocation7 + $0x80] sm:$0xf0]  ;;  %v1297_v27 = vor.u32 %v1554_v23, %v1296_v22  ;;  %v1404_v31 = vld [vmem:[#allocation7 + $0x228] sm:$0xf] }
  0x1d   :  { %1123 = vmatmul.msk.bf16.vlgmr.msra.gmra.mxu1 %vm137_vm0, %v102_v13  ;;  %712 = vmatpush.bf16.msrb.mxu0 %v1213_v16  ;;  %v1284_v28 = vld [vmem:[#allocation7 + $0x138] sm:$0xf]  ;;  %v1551_v29 = vld [vmem:[#allocation7 + $0x140] sm:$0xf0]  ;;  %v1189_v30 = vor.u32 %v1527_v26, %v1188_v25  ;;  %v1581_v32 = vld [vmem:[#allocation7 + $0x230] sm:$0xf0] }
  0x1e   :  { %1124 = vmatmul.msk.bf16.vlgmr.msra.gmra.mxu2 %vm137_vm0, %v102_v13  ;;  %1125 = vmatmul.msk.bf16.vlgmr.msra.gmra.mxu3 %vm137_vm0, %v102_v13  ;;  %v1176_v33 = vld [vmem:[#allocation7 + $0x60] sm:$0xf]  ;;  %v1524_v34 = vld [vmem:[#allocation7 + $0x68] sm:$0xf0]  ;;  %v1285_v35 = vor.u32 %v1551_v29, %v1284_v28  ;;  %v1405_v37 = vor.u32 %v1581_v32, %v1404_v31  ;;  %v1214_v43 = vld [vmem:[#allocation7 + $0xb4] sm:$0xf0] }
  0x1f   :  { %725 = vmatpush.bf16.msrb.mxu1 %v1309_v21  ;;  %v1272_v36 = vld [vmem:[#allocation7 + $0x120] sm:$0xf]  ;;  %v1548_v38 = vld [vmem:[#allocation7 + $0x128] sm:$0xf0]  ;;  %v1392_v44 = vld [vmem:[#allocation7 + $0x210] sm:$0xf]  ;;  %v1177_v45 = vor.u32 %v1524_v34, %v1176_v33 }
  0x20   :  { %v1416_v39 = vld [vmem:[#allocation7 + $0x240] sm:$0xf]  ;;  %v1584_v40 = vld [vmem:[#allocation7 + $0x248] sm:$0xf0]  ;;  %738 = vmatpush.bf16.msrb.mxu2 %v1405_v37  ;;  %v1164_v46 = vld [vmem:[#allocation7 + $0x48] sm:$0xf]  ;;  %v1273_v50 = vor.u32 %v1548_v38, %v1272_v36 }
  0x21   :  { %713 = vmatpush.bf16.msrb.mxu0 %v1201_v24  ;;  %v1417_v41 = vor.u32 %v1584_v40, %v1416_v39  ;;  %v1532_v42 = vld [vmem:[#allocation7 + $0xac] sm:$0xf]  ;;  %v1521_v47 = vld [vmem:[#allocation7 + $0x50] sm:$0xf0]  ;;  %v1578_v49 = vld [vmem:[#allocation7 + $0x218] sm:$0xf0] }
  0x22   :  { %v1217_v48 = vor.u32 %v1532_v42, %v1214_v43  ;;  %v1260_v51 = vld [vmem:[#allocation7 + $0x108] sm:$0xf]  ;;  %v1545_v52 = vld [vmem:[#allocation7 + $0x110] sm:$0xf0]  ;;  %v1393_v53 = vor.u32 %v1578_v49, %v1392_v44  ;;  %v1202_v55 = vld [vmem:[#allocation7 + $0x9c] sm:$0xf0]  ;;  %v1165_v60 = vor.u32 %v1521_v47, %v1164_v46 }
  0x23   :  { %726 = vmatpush.bf16.msrb.mxu1 %v1297_v27  ;;  %758 = vmatpush.bf16.msrb.mxu3 %v1417_v41  ;;  %v1529_v54 = vld [vmem:[#allocation7 + $0x94] sm:$0xf]  ;;  %v1380_v56 = vld [vmem:[#allocation7 + $0x1f8] sm:$0xf]  ;;  %v1575_v57 = vld [vmem:[#allocation7 + $0x200] sm:$0xf0]  ;;  %v1261_v63 = vor.u32 %v1545_v52, %v1260_v51 }
  0x24   :  { %739 = vmatpush.bf16.msrb.mxu2 %v1393_v53  ;;  %v1205_v58 = vor.u32 %v1529_v54, %v1202_v55  ;;  %v1381_v59 = vor.u32 %v1575_v57, %v1380_v56  ;;  %v1152_v61 = vld [vmem:[#allocation7 + $0x30] sm:$0xf]  ;;  %v1518_v62 = vld [vmem:[#allocation7 + $0x38] sm:$0xf0]  ;;  %v1190_v1 = vld [vmem:[#allocation7 + $0x84] sm:$0xf0] }
  0x25   :  { %714 = vmatpush.bf16.msrb.mxu0 %v1189_v30  ;;  %v1526_v0 = vld [vmem:[#allocation7 + $0x7c] sm:$0xf]  ;;  %v1368_v2 = vld [vmem:[#allocation7 + $0x1e0] sm:$0xf]  ;;  %v1248_v3 = vld [vmem:[#allocation7 + $0xf0] sm:$0xf]  ;;  %v1153_v9 = vor.u32 %v1518_v62, %v1152_v61 }
  0x26   :  { %v1542_v4 = vld [vmem:[#allocation7 + $0xf8] sm:$0xf0]  ;;  %v1193_v5 = vor.u32 %v1526_v0, %v1190_v1  ;;  %v1572_v6 = vld [vmem:[#allocation7 + $0x1e8] sm:$0xf0]  ;;  %v1523_v8 = vld [vmem:[#allocation7 + $0x64] sm:$0xf] }
  0x27   :  { %727 = vmatpush.bf16.msrb.mxu1 %v1285_v35  ;;  %764 = vmatpush.bf16.msra.mxu3 %v1217_v48  ;;  %v1369_v7 = vor.u32 %v1572_v6, %v1368_v2  ;;  %v1178_v10 = vld [vmem:[#allocation7 + $0x6c] sm:$0xf0]  ;;  %v1356_v11 = vld [vmem:[#allocation7 + $0x1c8] sm:$0xf]  ;;  %v1569_v12 = vld [vmem:[#allocation7 + $0x1d0] sm:$0xf0]  ;;  %v1249_v15 = vor.u32 %v1542_v4, %v1248_v3 }
  0x28   :  { %740 = vmatpush.bf16.msrb.mxu2 %v1381_v59  ;;  %v1140_v13 = vld [vmem:[#allocation7 + $0x18] sm:$0xf]  ;;  %v1515_v14 = vld [vmem:[#allocation7 + $0x20] sm:$0xf0]  ;;  %v1181_v18 = vor.u32 %v1523_v8, %v1178_v10  ;;  %v1357_v19 = vor.u32 %v1569_v12, %v1356_v11  ;;  %v1128_v21 = vld [vmem:[#allocation7] sm:$0xf] }
  0x29   :  { %715 = vmatpush.bf16.msrb.mxu0 %v1177_v45  ;;  %v1236_v16 = vld [vmem:[#allocation7 + $0xd8] sm:$0xf]  ;;  %v1539_v17 = vld [vmem:[#allocation7 + $0xe0] sm:$0xf0]  ;;  %v1141_v20 = vor.u32 %v1515_v14, %v1140_v13  ;;  %v1512_v22 = vld [vmem:[#allocation7 + $0x8] sm:$0xf0] }
  0x2a   :  { %v1556_v23 = vld [vmem:[#allocation7 + $0x16c] sm:$0xf]  ;;  %v1237_v24 = vor.u32 %v1539_v17, %v1236_v16  ;;  %v1310_v25 = vld [vmem:[#allocation7 + $0x174] sm:$0xf0]  ;;  %v1224_v26 = vld [vmem:[#allocation7 + $0xc0] sm:$0xf]  ;;  %v1129_v30 = vor.u32 %v1512_v22, %v1128_v21 }
  0x2b   :  { %728 = vmatpush.bf16.msrb.mxu1 %v1273_v50  ;;  %765 = vmatpush.bf16.msra.mxu3 %v1205_v58  ;;  %v1536_v27 = vld [vmem:[#allocation7 + $0xc8] sm:$0xf0]  ;;  %v1406_v29 = vld [vmem:[#allocation7 + $0x234] sm:$0xf0]  ;;  %v1313_v31 = vor.u32 %v1556_v23, %v1310_v25  ;;  %v1553_v33 = vld [vmem:[#allocation7 + $0x154] sm:$0xf] }
  0x2c   :  { %741 = vmatpush.bf16.msrb.mxu2 %v1369_v7  ;;  %v1580_v28 = vld [vmem:[#allocation7 + $0x22c] sm:$0xf]  ;;  %v1225_v32 = vor.u32 %v1536_v27, %v1224_v26  ;;  %v1298_v34 = vld [vmem:[#allocation7 + $0x15c] sm:$0xf0]  ;;  %v1577_v36 = vld [vmem:[#allocation7 + $0x214] sm:$0xf] }
  0x2d   :  { %716 = vmatpush.bf16.msrb.mxu0 %v1165_v60  ;;  %v1409_v35 = vor.u32 %v1580_v28, %v1406_v29  ;;  %v1394_v37 = vld [vmem:[#allocation7 + $0x21c] sm:$0xf0]  ;;  %v1301_v38 = vor.u32 %v1553_v33, %v1298_v34  ;;  %v1550_v39 = vld [vmem:[#allocation7 + $0x13c] sm:$0xf]  ;;  %v1286_v40 = vld [vmem:[#allocation7 + $0x144] sm:$0xf0] }
  0x2e   :  { %v1397_v41 = vor.u32 %v1577_v36, %v1394_v37  ;;  %v1289_v42 = vor.u32 %v1550_v39, %v1286_v40  ;;  %v1547_v43 = vld [vmem:[#allocation7 + $0x124] sm:$0xf]  ;;  %v1274_v44 = vld [vmem:[#allocation7 + $0x12c] sm:$0xf0]  ;;  %v1544_v46 = vld [vmem:[#allocation7 + $0x10c] sm:$0xf] }
  0x2f   :  { %729 = vmatpush.bf16.msrb.mxu1 %v1261_v63  ;;  %766 = vmatpush.bf16.msra.mxu3 %v1193_v5  ;;  %v1277_v45 = vor.u32 %v1547_v43, %v1274_v44  ;;  %v1262_v47 = vld [vmem:[#allocation7 + $0x114] sm:$0xf0]  ;;  %v1541_v49 = vld [vmem:[#allocation7 + $0xf4] sm:$0xf]  ;;  %v1250_v50 = vld [vmem:[#allocation7 + $0xfc] sm:$0xf0] }
  0x30   :  { %742 = vmatpush.bf16.msrb.mxu2 %v1357_v19  ;;  %v1265_v48 = vor.u32 %v1544_v46, %v1262_v47  ;;  %v1253_v51 = vor.u32 %v1541_v49, %v1250_v50  ;;  %v1574_v52 = vld [vmem:[#allocation7 + $0x1fc] sm:$0xf]  ;;  %v1382_v53 = vld [vmem:[#allocation7 + $0x204] sm:$0xf0]  ;;  %v1520_v55 = vld [vmem:[#allocation7 + $0x4c] sm:$0xf] }
  0x31   :  { %717 = vmatpush.bf16.msrb.mxu0 %v1153_v9  ;;  %v1385_v54 = vor.u32 %v1574_v52, %v1382_v53  ;;  %v1166_v56 = vld [vmem:[#allocation7 + $0x54] sm:$0xf0]  ;;  %v1344_v58 = vld [vmem:[#allocation7 + $0x1b0] sm:$0xf]  ;;  %v1566_v59 = vld [vmem:[#allocation7 + $0x1b8] sm:$0xf0] }
  0x32   :  { %v1169_v57 = vor.u32 %v1520_v55, %v1166_v56  ;;  %v1345_v60 = vor.u32 %v1566_v59, %v1344_v58  ;;  %v1538_v61 = vld [vmem:[#allocation7 + $0xdc] sm:$0xf]  ;;  %v1238_v62 = vld [vmem:[#allocation7 + $0xe4] sm:$0xf0]  ;;  %v1571_v0 = vld [vmem:[#allocation7 + $0x1e4] sm:$0xf] }
  0x33   :  { %730 = vmatpush.bf16.msrb.mxu1 %v1249_v15  ;;  %767 = vmatpush.bf16.msra.mxu3 %v1181_v18  ;;  %v1241_v63 = vor.u32 %v1538_v61, %v1238_v62  ;;  %v1370_v1 = vld [vmem:[#allocation7 + $0x1ec] sm:$0xf0]  ;;  %v1517_v3 = vld [vmem:[#allocation7 + $0x34] sm:$0xf]  ;;  %v1154_v4 = vld [vmem:[#allocation7 + $0x3c] sm:$0xf0] }
  0x34   :  { %743 = vmatpush.bf16.msrb.mxu2 %v1345_v60  ;;  %v1373_v2 = vor.u32 %v1571_v0, %v1370_v1  ;;  %v1157_v5 = vor.u32 %v1517_v3, %v1154_v4  ;;  %v1332_v6 = vld [vmem:[#allocation7 + $0x198] sm:$0xf]  ;;  %v1563_v7 = vld [vmem:[#allocation7 + $0x1a0] sm:$0xf0]  ;;  %v1226_v10 = vld [vmem:[#allocation7 + $0xcc] sm:$0xf0] }
  0x35   :  { %718 = vmatpush.bf16.msrb.mxu0 %v1141_v20  ;;  %v1333_v8 = vor.u32 %v1563_v7, %v1332_v6  ;;  %v1535_v9 = vld [vmem:[#allocation7 + $0xc4] sm:$0xf]  ;;  %v1568_v12 = vld [vmem:[#allocation7 + $0x1cc] sm:$0xf]  ;;  %v1358_v13 = vld [vmem:[#allocation7 + $0x1d4] sm:$0xf0] }
  0x36   :  { %v1229_v11 = vor.u32 %v1535_v9, %v1226_v10  ;;  %v1361_v14 = vor.u32 %v1568_v12, %v1358_v13  ;;  %v1514_v15 = vld [vmem:[#allocation7 + $0x1c] sm:$0xf]  ;;  %v1142_v16 = vld [vmem:[#allocation7 + $0x24] sm:$0xf0]  ;;  %v1320_v17 = vld [vmem:[#allocation7 + $0x180] sm:$0xf] }
  0x37   :  { %731 = vmatpush.bf16.msrb.mxu1 %v1237_v24  ;;  %768 = vmatpush.bf16.msra.mxu3 %v1169_v57  ;;  %v1560_v18 = vld [vmem:[#allocation7 + $0x188] sm:$0xf0]  ;;  %v1145_v19 = vor.u32 %v1514_v15, %v1142_v16  ;;  %v1565_v21 = vld [vmem:[#allocation7 + $0x1b4] sm:$0xf]  ;;  %v1346_v22 = vld [vmem:[#allocation7 + $0x1bc] sm:$0xf0] }
  0x38   :  { %744 = vmatpush.bf16.msrb.mxu2 %v1333_v8  ;;  %v1321_v20 = vor.u32 %v1560_v18, %v1320_v17  ;;  %v1349_v23 = vor.u32 %v1565_v21, %v1346_v22  ;;  %v1511_v24 = vld [vmem:[#allocation7 + $0x4] sm:$0xf]  ;;  %v1130_v25 = vld [vmem:[#allocation7 + $0xc] sm:$0xf0]  ;;  %v107_v36 = vld [vmem:[#allocation6] sm:$0xf] }
  0x39   :  { %719 = vmatpush.bf16.msrb.mxu0 %v1129_v30  ;;  %v1133_v26 = vor.u32 %v1511_v24, %v1130_v25  ;;  %v1583_v27 = vld [vmem:[#allocation7 + $0x244] sm:$0xf]  ;;  %v1418_v28 = vld [vmem:[#allocation7 + $0x24c] sm:$0xf0]  ;;  %v1562_v30 = vld [vmem:[#allocation7 + $0x19c] sm:$0xf] }
  0x3a   :  { %v1421_v29 = vor.u32 %v1583_v27, %v1418_v28  ;;  %v1559_v33 = vld [vmem:[#allocation7 + $0x184] sm:$0xf]  ;;  %v1322_v34 = vld [vmem:[#allocation7 + $0x18c] sm:$0xf0]  ;;  %v109_v37 = vperm.slane %v107_v36, 0  ;;  %v111_v47 = vperm.slane %v107_v36, 2 }
  0x3b   :  { %732 = vmatpush.bf16.msrb.mxu1 %v1225_v32  ;;  %769 = vmatpush.bf16.msra.mxu3 %v1157_v5  ;;  %v1582_v43 = vld [vmem:[#allocation7 + $0x238] sm:$0xf0]  ;;  %v1424_v49 = vld [vmem:[#allocation7 + $0x248] sm:$0xf]  ;;  %v1585_v50 = vld [vmem:[#allocation7 + $0x250] sm:$0xf0] }
  0x3c   :  { %745 = vmatpush.bf16.msrb.mxu2 %v1321_v20  ;;  %v112_v52 = vperm.slane %v107_v36, 3  ;;  %v1400_v53 = vld [vmem:[#allocation7 + $0x218] sm:$0xf]  ;;  %v1425_v55 = vor.u32 %v1585_v50, %v1424_v49  ;;  %v1220_v61 = vld [vmem:[#allocation7 + $0xb0] sm:$0xf]  ;;  %vm1033_vm1 = vcmask 1045504  }
  0x3d   :  { %777 = vmatpush.bf16.msra.mxu0 %v1313_v31  ;;  %v1334_v31 = vld [vmem:[#allocation7 + $0x1a4] sm:$0xf0]  ;;  %v1534_v62 = vld [vmem:[#allocation7 + $0xb8] sm:$0xf0]  ;;  %v1388_v3 = vld [vmem:[#allocation7 + $0x200] sm:$0xf] }
  0x3e   :  { %v1337_v32 = vor.u32 %v1562_v30, %v1334_v31  ;;  %v1576_v4 = vld [vmem:[#allocation7 + $0x208] sm:$0xf0]  ;;  %v1221_v8 = vor.u32 %v1534_v62, %v1220_v61  ;;  %v1208_v12 = vld [vmem:[#allocation7 + $0x98] sm:$0xf]  ;;  %v1531_v13 = vld [vmem:[#allocation7 + $0xa0] sm:$0xf0] }
  0x3f   :  { %790 = vmatpush.bf16.msra.mxu1 %v1409_v35  ;;  %770 = vmatpush.bf16.msra.mxu3 %v1145_v19  ;;  %v1325_v35 = vor.u32 %v1559_v33, %v1322_v34  ;;  %v1555_v16 = vld [vmem:[#allocation7 + $0x160] sm:$0xf0]  ;;  %v1376_v17 = vld [vmem:[#allocation7 + $0x1e8] sm:$0xf]  ;;  %v1573_v18 = vld [vmem:[#allocation7 + $0x1f0] sm:$0xf0]  ;;  %v1209_v20 = vor.u32 %v1531_v13, %v1208_v12 }
  0x40   :  { %810 = vmatpush.bf16.msra.mxu2 %v1421_v29  ;;  %v1196_v24 = vld [vmem:[#allocation7 + $0x80] sm:$0xf]  ;;  %v1528_v25 = vld [vmem:[#allocation7 + $0x88] sm:$0xf0]  ;;  %v1364_v28 = vld [vmem:[#allocation7 + $0x1d0] sm:$0xf] }
  0x41   :  { %778 = vmatpush.bf16.msra.mxu0 %v1301_v38  ;;  %v110_v38 = vperm.slane %v107_v36, 1  ;;  %v1552_v27 = vld [vmem:[#allocation7 + $0x148] sm:$0xf0]  ;;  %v1570_v29 = vld [vmem:[#allocation7 + $0x1d8] sm:$0xf0]  ;;  %v1197_v30 = vor.u32 %v1528_v25, %v1196_v24  ;;  %vm1029_vm2 = vcmask 359424  }
  0x42   :  { %v1525_v33 = vld [vmem:[#allocation7 + $0x70] sm:$0xf0]  ;;  %v1365_v34 = vor.u32 %v1570_v29, %v1364_v28  ;;  %v1564_v49 = vld [vmem:[#allocation7 + $0x1a8] sm:$0xf0]  ;;  %v1594_v28 = vld [vmem:[#allocation9 + $0x40] sm:$0xff]  ;;  %vm1097_vm7 = vcmask 31744  }
  0x43   :  { %791 = vmatpush.bf16.msra.mxu1 %v1397_v41  ;;  %771 = vmatpush.bf16.msra.mxu3 %v1133_v26  ;;  %v1292_v26 = vld [vmem:[#allocation7 + $0x140] sm:$0xf]  ;;  %v1549_v36 = vld [vmem:[#allocation7 + $0x130] sm:$0xf0] }
  0x44   :  { %v1293_v31 = vor.u32 %v1552_v27, %v1292_v26  ;;  %v1561_v61 = vld [vmem:[#allocation7 + $0x190] sm:$0xf0]  ;;  %v1595_v26 = vld [vmem:[#allocation9 + $0x48] sm:$0xff] }
  0x45   :  { %779 = vmatpush.bf16.msra.mxu0 %v1289_v42  ;;  %v1412_v42 = vld [vmem:[#allocation7 + $0x230] sm:$0xf] }
  0x47   :  { %792 = vmatpush.bf16.msra.mxu1 %v1385_v54  ;;  %v1579_v54 = vld [vmem:[#allocation7 + $0x220] sm:$0xf0] }
  0x48   :  { %v1401_v60 = vor.u32 %v1579_v54, %v1400_v53  ;;  %v1160_v53 = vld [vmem:[#allocation7 + $0x38] sm:$0xf]  ;;  %v1519_v54 = vld [vmem:[#allocation7 + $0x40] sm:$0xf0] }
  0x49   :  { %780 = vmatpush.bf16.msra.mxu0 %v1277_v45  ;;  %v1161_v62 = vor.u32 %v1519_v54, %v1160_v53 }
  0x4b   :  { %793 = vmatpush.bf16.msra.mxu1 %v1373_v2  ;;  %v1558_v2 = vld [vmem:[#allocation7 + $0x178] sm:$0xf0] }
  0x4d   :  { %781 = vmatpush.bf16.msra.mxu0 %v1265_v48  ;;  %v1413_v48 = vor.u32 %v1582_v43, %v1412_v42  ;;  %v1172_v42 = vld [vmem:[#allocation7 + $0x50] sm:$0xf]  ;;  %v1522_v43 = vld [vmem:[#allocation7 + $0x58] sm:$0xf0] }
  0x4e   :  { %v1173_v50 = vor.u32 %v1522_v43, %v1172_v42  ;;  %v1603_v43 = vld [vmem:[#allocation9 + $0x88] sm:$0xff] }
  0x4f   :  { %794 = vmatpush.bf16.msra.mxu1 %v1361_v14  ;;  %v1304_v14 = vld [vmem:[#allocation7 + $0x158] sm:$0xf] }
  0x50   :  { %v1305_v22 = vor.u32 %v1555_v16, %v1304_v14  ;;  %v1590_v14 = vld [vmem:[#allocation9 + $0x20] sm:$0xff]  ;;  %v1589_v16 = vld [vmem:[#allocation9 + $0x18] sm:$0xff] }
  0x51   :  { %782 = vmatpush.bf16.msra.mxu0 %v1253_v51 }
  0x53   :  { %795 = vmatpush.bf16.msra.mxu1 %v1349_v23  ;;  %v1377_v23 = vor.u32 %v1573_v18, %v1376_v17  ;;  %v1588_v17 = vld [vmem:[#allocation9 + $0x10] sm:$0xff]  ;;  %v1601_v18 = vld [vmem:[#allocation9 + $0x78] sm:$0xff] }
  0x55   :  { %783 = vmatpush.bf16.msra.mxu0 %v1241_v63  ;;  %v1316_v63 = vld [vmem:[#allocation7 + $0x170] sm:$0xf] }
  0x56   :  { %v1317_v10 = vor.u32 %v1558_v2, %v1316_v63 }
  0x57   :  { %796 = vmatpush.bf16.msra.mxu1 %v1337_v32  ;;  %v1184_v32 = vld [vmem:[#allocation7 + $0x68] sm:$0xf] }
  0x59   :  { %784 = vmatpush.bf16.msra.mxu0 %v1229_v11  ;;  %v1389_v11 = vor.u32 %v1576_v4, %v1388_v3  ;;  %v1244_v3 = vld [vmem:[#allocation7 + $0xe0] sm:$0xf]  ;;  %v1540_v4 = vld [vmem:[#allocation7 + $0xe8] sm:$0xf0] }
  0x5b   :  { %797 = vmatpush.bf16.msra.mxu1 %v1325_v35  ;;  %v1280_v35 = vld [vmem:[#allocation7 + $0x128] sm:$0xf] }
  0x99   :  { %v150_v39 = vpop.f32.mrf.mxu0 }
  0x9a   :  { %v151_v40 = vadd.f32 %v150_v39, %v109_v37  ;;  %v163_v41 = vpop.f32.mrf.mxu1  ;;  %v1593_v37 = vld [vmem:[#allocation9 + $0x38] sm:$0xff]  ;;  %v1567_v39 = vld [vmem:[#allocation7 + $0x1c0] sm:$0xf0] }
  0x9b   :  { %v164_v44 = vadd.f32 %v163_v41, %v110_v38  ;;  %v1352_v38 = vld [vmem:[#allocation7 + $0x1b8] sm:$0xf]  ;;  %v1281_v41 = vor.u32 %v1549_v36, %v1280_v35 }
  0x9c   :  { %v193_v45 = vmax.f32 %v151_v40, 0.0  ;;  %v1185_v40 = vor.u32 %v1525_v33, %v1184_v32  ;;  %v1503_v32 = vld [vmem:[#allocation9 + $0x90] sm:$0xf]  ;;  %v1604_v33 = vld [vmem:[#allocation9 + $0x90] sm:$0x30] }
  0x9d   :  { %v194_v46 = vmax.f32 %v164_v44, 0.0  ;;  %v1353_v44 = vor.u32 %v1567_v39, %v1352_v38 }
  0x9e   :  { %v1817_v51 = vpack.c.bf16 %v193_v45, %v193_v45  ;;  %v1268_v45 = vld [vmem:[#allocation7 + $0x110] sm:$0xf] }
  0x9f   :  { %v1819_v56 = vpack.c.bf16 %v194_v46, %v194_v46  ;;  %v1546_v46 = vld [vmem:[#allocation7 + $0x118] sm:$0xf0] }
  0xa0   :  { %720 = vmatmul.bf16.vlgmr.msrb.gmra.mxu0 %v1817_v51 }
  0xa1   :  { %v176_v57 = vpop.f32.mrf.mxu2  ;;  %v189_v59 = vpop.f32.mrf.mxu3  ;;  %733 = vmatmul.bf16.vlgmr.msrb.gmra.mxu1 %v1819_v56  ;;  %842 = vmatpush.bf16.msrb.mxu0 %v1413_v48  ;;  %v1340_v48 = vld [vmem:[#allocation7 + $0x1a0] sm:$0xf] }
  0xa2   :  { %v177_v58 = vadd.f32 %v176_v57, %v111_v47  ;;  %v152_v0 = vpop.f32.mrf.mxu0  ;;  %v190_v1 = vadd.f32 %v189_v59, %v112_v52  ;;  %v165_v5 = vpop.f32.mrf.mxu1  ;;  %862 = vmatpush.bf16.msrb.mxu1 %v1425_v55  ;;  %v1592_v47 = vld [vmem:[#allocation9 + $0x30] sm:$0xff]  ;;  %v1269_v52 = vor.u32 %v1546_v46, %v1268_v45  ;;  %v1341_v55 = vor.u32 %v1564_v49, %v1340_v48  ;;  %v1256_v57 = vld [vmem:[#allocation7 + $0xf8] sm:$0xf]  ;;  %v1591_v59 = vld [vmem:[#allocation9 + $0x28] sm:$0xff] }
  0xa3   :  { %v1148_v0 = vld [vmem:[#allocation7 + $0x20] sm:$0xf] }
  0xa4   :  { %v195_v6 = vmax.f32 %v177_v58, 0.0  ;;  %v196_v7 = vmax.f32 %v190_v1, 0.0  ;;  %v1543_v58 = vld [vmem:[#allocation7 + $0x100] sm:$0xf0]  ;;  %v1516_v1 = vld [vmem:[#allocation7 + $0x28] sm:$0xf0] }
  0xa5   :  { %843 = vmatpush.bf16.msrb.mxu0 %v1401_v60  ;;  %v1328_v60 = vld [vmem:[#allocation7 + $0x188] sm:$0xf]  ;;  %v1257_v63 = vor.u32 %v1543_v58, %v1256_v57  ;;  %v1149_v5 = vor.u32 %v1516_v1, %v1148_v0 }
  0xa6   :  { %v1823_v9 = vpack.c.bf16 %v195_v6, %v195_v6  ;;  %v1825_v15 = vpack.c.bf16 %v196_v7, %v196_v7  ;;  %v1329_v2 = vor.u32 %v1561_v61, %v1328_v60  ;;  %v1245_v6 = vor.u32 %v1540_v4, %v1244_v3  ;;  %v1136_v7 = vld [vmem:[#allocation7 + $0x8] sm:$0xf] }
  0xa8   :  { %746 = vmatmul.bf16.vlgmr.msrb.gmra.mxu2 %v1823_v9  ;;  %1426 = vmatmul.msk.bf16.vlgmr.msrb.gmra.mxu3 %vm137_vm0, %v1825_v15 }
  0xa9   :  { %v178_v19 = vpop.f32.mrf.mxu2  ;;  %816 = vmatpush.bf16.msrb.mxu2 %v1221_v8  ;;  %v191_v21 = vpop.f32.mrf.mxu3  ;;  %829 = vmatpush.bf16.msrb.mxu3 %v1317_v10  ;;  %v1513_v8 = vld [vmem:[#allocation7 + $0x10] sm:$0xf0]  ;;  %v1232_v10 = vld [vmem:[#allocation7 + $0xc8] sm:$0xf] }
  0xaa   :  { %844 = vmatpush.bf16.msrb.mxu0 %v1389_v11  ;;  %v1537_v11 = vld [vmem:[#allocation7 + $0xd0] sm:$0xf0]  ;;  %v1137_v12 = vor.u32 %v1513_v8, %v1136_v7  ;;  %v1587_v19 = vld [vmem:[#allocation9 + $0x8] sm:$0xff]  ;;  %v1598_v21 = vld [vmem:[#allocation9 + $0x60] sm:$0xff] }
  0xab   :  { %v1233_v13 = vor.u32 %v1537_v11, %v1232_v10 }
  0xad   :  { %817 = vmatpush.bf16.msrb.mxu2 %v1209_v20  ;;  %830 = vmatpush.bf16.msrb.mxu3 %v1305_v22  ;;  %v1586_v20 = vld [vmem:[#allocation9] sm:$0xff]  ;;  %v301_v22 = vld [vmem:[%s1853_s4] sm:$0x7] }
  0xae   :  { %845 = vmatpush.bf16.msrb.mxu0 %v1377_v23  ;;  %v303_v25 = vperm.slane %v301_v22, 0  ;;  %v305_v3 = vperm.slane %v301_v22, 2 }
  0xb0   :  { %785 = vmatmul.bf16.vlgmr.msra.gmra.mxu0 %v1819_v56 }
  0xb1   :  { %818 = vmatpush.bf16.msrb.mxu2 %v1197_v30  ;;  %831 = vmatpush.bf16.msrb.mxu3 %v1293_v31 }
  0xb2   :  { %798 = vmatmul.bf16.vlgmr.msra.gmra.mxu1 %v1823_v9  ;;  %846 = vmatpush.bf16.msrb.mxu0 %v1365_v34  ;;  %v1504_v34 = vor.u32 %v1604_v33, %v1503_v32 }
  0xb3   :  { %1037 = vmatpush.bf16.msra.mxu1 %v1593_v37 }
  0xb4   :  { %v1035_v38 = vsel %vm1033_vm1, %v1504_v34, 0 }
  0xb5   :  { %819 = vmatpush.bf16.msrb.mxu2 %v1185_v40  ;;  %832 = vmatpush.bf16.msrb.mxu3 %v1281_v41 }
  0xb6   :  { %847 = vmatpush.bf16.msrb.mxu0 %v1353_v44 }
  0xb7   :  { %1038 = vmatpush.bf16.msra.mxu1 %v1592_v47  ;;  %v1602_v47 = vld [vmem:[#allocation9 + $0x80] sm:$0xff] }
  0xb8   :  { %1427 = vmatmul.msk.bf16.vlgmr.msra.gmra.mxu2 %vm137_vm0, %v1825_v15  ;;  %772 = vmatmul.bf16.vlgmr.msra.gmra.mxu3 %v1817_v51 }
  0xb9   :  { %820 = vmatpush.bf16.msrb.mxu2 %v1173_v50  ;;  %833 = vmatpush.bf16.msrb.mxu3 %v1269_v52  ;;  %v304_v50 = vperm.slane %v301_v22, 1 }
  0xba   :  { %848 = vmatpush.bf16.msrb.mxu0 %v1341_v55 }
  0xbb   :  { %1039 = vmatpush.bf16.msra.mxu1 %v1591_v59 }
  0xbd   :  { %821 = vmatpush.bf16.msrb.mxu2 %v1161_v62  ;;  %834 = vmatpush.bf16.msrb.mxu3 %v1257_v63 }
  0xbe   :  { %849 = vmatpush.bf16.msrb.mxu0 %v1329_v2 }
  0xbf   :  { %1040 = vmatpush.bf16.msra.mxu1 %v1590_v14 }
  0xc1   :  { %822 = vmatpush.bf16.msrb.mxu2 %v1149_v5  ;;  %835 = vmatpush.bf16.msrb.mxu3 %v1245_v6 }
  0xc2   :  { %850 = vmatmul.bf16.vlgmr.msrb.gmra.mxu0 %v1823_v9  ;;  %1428 = vmatmul.msk.bf16.vlgmr.msrb.gmra.mxu1 %vm137_vm0, %v1825_v15  ;;  %v1600_v9 = vld [vmem:[#allocation9 + $0x70] sm:$0xff]  ;;  %v1599_v15 = vld [vmem:[#allocation9 + $0x68] sm:$0xff] }
  0xc3   :  { %1041 = vmatpush.bf16.msra.mxu1 %v1589_v16 }
  0xc5   :  { %823 = vmatpush.bf16.msrb.mxu2 %v1137_v12  ;;  %836 = vmatpush.bf16.msrb.mxu3 %v1233_v13 }
  0xc7   :  { %1042 = vmatpush.bf16.msra.mxu1 %v1588_v17 }
  0xc8   :  { %824 = vmatmul.bf16.vlgmr.msrb.gmra.mxu2 %v1817_v51  ;;  %837 = vmatmul.bf16.vlgmr.msrb.gmra.mxu3 %v1819_v56  ;;  %v1597_v51 = vld [vmem:[#allocation9 + $0x58] sm:$0xff]  ;;  %v1596_v56 = vld [vmem:[#allocation9 + $0x50] sm:$0xff] }
  0xc9   :  { %1050 = vmatpush.bf16.msra.mxu2 %v1601_v18  ;;  %1068 = vmatpush.bf16.msra.mxu3 %v1035_v38 }
  0xcb   :  { %1043 = vmatpush.bf16.msra.mxu1 %v1587_v19  ;;  %v1616_v19 = vld [vmem:[%s1855_s6] ss:$0 sm:$0xff] }
  0xcd   :  { %1051 = vmatpush.bf16.msra.mxu2 %v1600_v9  ;;  %1069 = vmatpush.bf16.msra.mxu3 %v1603_v43 }
  0xcf   :  { %1044 = vmatpush.bf16.msra.mxu1 %v1586_v20 }
  0xd1   :  { %1052 = vmatpush.bf16.msra.mxu2 %v1599_v15  ;;  %1070 = vmatpush.bf16.msra.mxu3 %v1602_v47 }
  0xd5   :  { %1053 = vmatpush.bf16.msra.mxu2 %v1598_v21 }
  0xd9   :  { %1054 = vmatpush.bf16.msra.mxu2 %v1597_v51 }
  0xdd   :  { %1055 = vmatpush.bf16.msra.mxu2 %v1596_v56 }
  0xe1   :  { %1056 = vmatpush.bf16.msra.mxu2 %v1595_v26 }
  0xe5   :  { %1057 = vmatpush.bf16.msra.mxu2 %v1594_v28 }
 0x11d   :  { %v721_v23 = vpop.f32.mrf.mxu0 }
 0x11e   :  { %v734_v24 = vpop.f32.mrf.mxu1  ;;  %v722_v27 = vadd.f32 %v721_v23, %v303_v25 }
 0x120   :  { %v735_v31 = vadd.f32 %v734_v24, %v722_v27 }
 0x125   :  { %v723_v29 = vpop.f32.mrf.mxu0 }
 0x126   :  { %v736_v30 = vpop.f32.mrf.mxu1 }
 0x12b   :  { %v747_v35 = vpop.f32.mrf.mxu2  ;;  %v760_v37 = vpop.f32.mrf.mxu3 }
 0x12c   :  { %v748_v36 = vadd.f32 %v747_v35, %v735_v31 }
 0x12d   :  { %v786_v40 = vpop.f32.mrf.mxu0 }
 0x12e   :  { %v761_v39 = vadd.f32 %v760_v37, %v748_v36 }
 0x12f   :  { %v799_v41 = vpop.f32.mrf.mxu1 }
 0x130   :  { %v868_v42 = vmax.f32 %v761_v39, 0.0 }
 0x132   :  { %v871_v44 = vpack.c.bf16 %v868_v42, %v868_v42 }
 0x133   :  { %v749_v45 = vpop.f32.mrf.mxu2  ;;  %v762_v46 = vpop.f32.mrf.mxu3 }
 0x134   :  { %1045 = vmatmul.bf16.vlgmr.msra.gmra.mxu1 %v871_v44 }
 0x135   :  { %v788_v48 = vpop.f32.mrf.mxu0 }
 0x137   :  { %v801_v49 = vpop.f32.mrf.mxu1 }
 0x13b   :  { %v812_v52 = vpop.f32.mrf.mxu2  ;;  %v773_v53 = vpop.f32.mrf.mxu3 }
 0x13c   :  { %v774_v54 = vadd.f32 %v773_v53, %v304_v50 }
 0x13e   :  { %v787_v55 = vadd.f32 %v786_v40, %v774_v54 }
 0x13f   :  { %v851_v57 = vpop.f32.mrf.mxu0  ;;  %v864_v58 = vpop.f32.mrf.mxu1 }
 0x140   :  { %v800_v59 = vadd.f32 %v799_v41, %v787_v55 }
 0x142   :  { %v813_v60 = vadd.f32 %v812_v52, %v800_v59 }
 0x143   :  { %v814_v61 = vpop.f32.mrf.mxu2  ;;  %v775_v62 = vpop.f32.mrf.mxu3 }
 0x144   :  { %v869_v63 = vmax.f32 %v813_v60, 0.0 }
 0x146   :  { %v872_v0 = vpack.c.bf16 %v869_v63, %v869_v63 }
 0x147   :  { %v853_v1 = vpop.f32.mrf.mxu0  ;;  %v866_v2 = vpop.f32.mrf.mxu1 }
 0x148   :  { %1058 = vmatmul.bf16.vlgmr.msra.gmra.mxu2 %v872_v0 }
 0x14b   :  { %v825_v4 = vpop.f32.mrf.mxu2  ;;  %v838_v6 = vpop.f32.mrf.mxu3 }
 0x14c   :  { %v826_v5 = vadd.f32 %v825_v4, %v305_v3 }
 0x14e   :  { %v839_v7 = vadd.f32 %v838_v6, %v826_v5 }
 0x150   :  { %v852_v8 = vadd.f32 %v851_v57, %v839_v7 }
 0x152   :  { %v865_v10 = vadd.f32 %v864_v58, %v852_v8 }
 0x153   :  { %v827_v11 = vpop.f32.mrf.mxu2  ;;  %v840_v13 = vpop.f32.mrf.mxu3 }
 0x154   :  { %v870_v12 = vmax.f32 %v865_v10, 0.0 }
 0x156   :  { %v873_v14 = vpack.c.bf16 %v870_v12, %v870_v12 }
 0x158   :  { %1505 = vmatmul.msk.bf16.vlgmr.msra.gmra.mxu3 %vm1029_vm2, %v873_v14 }
 0x1b1   :  { %v1046_v16 = vpop.f32.mrf.mxu1 }
 0x1b2   :  { %v1047_v20 = vadd.f32 %v1616_v19, %v1046_v16 }
 0x1b9   :  { %v1048_v17 = vpop.f32.mrf.mxu1 }
 0x1cb   :  { %v1059_v18 = vpop.f32.mrf.mxu2 }
 0x1cc   :  { %v1060_v15 = vadd.f32 %v1059_v18, %v1047_v20 }
 0x1d3   :  { %v1061_v9 = vpop.f32.mrf.mxu2 }
 0x1db   :  { %v1072_v21 = vpop.f32.mrf.mxu3 }
 0x1dc   :  { %v1073_v51 = vadd.f32 %v1072_v21, %v1060_v15 }
 0x1de   :  { %v1506_v56 = vmul.f32 -1.442695, %v1073_v51 }
 0x1e0   :  { %1617 = vpow2.f32 %v1506_v56 }
 0x1e3   :  { %v1074_v22 = vpop.f32.mrf.mxu3 }
 0x1e6   :  { %v1618_v23 = vpop.eup %1617 }
 0x1e7   :  { %v1079_v24 = vadd.f32 1.0, %v1618_v23 }
 0x1e9   :  { %1619 = vrcp.f32 %v1079_v24  ;;  %v1091_v28 = vand.u32 2147483648, %v1079_v24  ;;  %v1089_v30 = vand.u32 2147483647, %v1079_v24  ;;  %vm1085_vm4 = vweird.f32 %v1079_v24 }
 0x1eb   :  { %v1092_v32 = vor.u32 1.1754944e-38, %v1091_v28  ;;  %vm1090_vm6 = vcmp.eq.f32.partialorder %v1089_v30, 8.507059e+37 }
 0x1ef   :  { %v1620_v25 = vpop.eup %1619 }
 0x1f0   :  { %v1081_v26 = vmul.f32 %v1620_v25, %v1079_v24  ;;  %vm1086_vm3 = vweird.f32 %v1620_v25 }
 0x1f1   :  { %vm1087_vm5 = vmor %vm1085_vm4, %vm1086_vm3 }
 0x1f2   :  { %v1082_v27 = vsub.f32 1.0, %v1081_v26 }
 0x1f4   :  { %v1083_v29 = vmul.f32 %v1620_v25, %v1082_v27 }
 0x1f6   :  { %v1084_v31 = vadd.f32 %v1620_v25, %v1083_v29 }
 0x1f8   :  { %v1088_v33 = vsel %vm1087_vm5, %v1620_v25, %v1084_v31 }
 0x1f9   :  { %v1093_v34 = vsel %vm1090_vm6, %v1092_v32, %v1088_v33 }
 0x1fa   :  { %v1095_v35 = vmul.f32 4.0, %v1093_v34 }
 0x1fc   :  { %v1096_v36 = vadd.f32 -2.0, %v1095_v35 }
 0x1fe   :  { %1098 = vst.msk [vmem:[%s1856_s7] sm:$0xff] %vm1097_vm7, %v1096_v36 }
 0x1ff   :  { %1103 = vsyncpa [#allocation3], 1 }
 0x200   :  { %1104 = vsyncpa [#allocation5], 1 }
 0x201   :  { %1105 = vsyncpa [#allocation8], 1 }

</bundles_post_ra>
